<compile_context>
chip_gen: v5e
topology: v5e:2x2
jax: 0.10.0
libtpu: 0.0.40
codegen_flags: <defaults>
</compile_context>

<pallas_src>
import functools

import jax
import jax.numpy as jnp
import numpy as np
from jax import lax
from jax.experimental import pallas as pl
from jax.experimental.pallas import tpu as pltpu


# x @ x^T without materializing a transpose: contract the lane (N) axis of both operands.
_XXT_DIMS = (((1,), (1,)), ((), ()))
# (C, C) @ (C, TN) standard matmul.
_ATTN_X_DIMS = (((1,), (0,)), ((), ()))

_SLACK_BYTES = 4 << 20


def _maybe_cast(x, dtype):
    return x if x.dtype == dtype else x.astype(dtype)


def _residual_store(o_ref, out_f32, x):
    """o = (attn @ x) + x; do the residual add in the I/O dtype when it is narrower."""
    if o_ref.dtype == x.dtype and x.dtype != jnp.float32:
        o_ref[...] = out_f32.astype(o_ref.dtype) + x
    else:
        o_ref[...] = (out_f32 + _maybe_cast(x, jnp.float32)).astype(o_ref.dtype)


def _stable_attention(energy, gamma, out_dtype, approx):
    """softmax(rowmax - energy) with gamma folded in, via the rowmin identity."""
    row_min = jnp.min(energy, axis=-1, keepdims=True)
    e_exp = jnp.exp(row_min - energy)          # max exponent per row is exactly 0
    denom = jnp.sum(e_exp, axis=-1, keepdims=True)
    inv = pl.reciprocal(denom, approx=approx)
    return (e_exp * inv * gamma).astype(out_dtype)


# ----------------------------------------------------------------------------- kernels
def _cam_fused_kernel(gamma_ref, x_ref, o_ref, *, compute_dtype):
    """Resident-x path. Grid = (B,); x_ref / o_ref are (C, N_pad) VMEM slabs."""
    x = x_ref[...]
    xc = _maybe_cast(x, compute_dtype)
    energy = lax.dot_general(xc, xc, dimension_numbers=_XXT_DIMS,
                             preferred_element_type=jnp.float32)        # (C, C) f32
    attn = _stable_attention(energy, gamma_ref[0], compute_dtype,
                             approx=compute_dtype != jnp.float32)
    out = lax.dot_general(attn, xc, dimension_numbers=_ATTN_X_DIMS,
                          preferred_element_type=jnp.float32)            # (C, N) f32
    _residual_store(o_ref, out, x)


def _cam_energy_kernel(gamma_ref, x_ref, attn_ref, energy_ref, *, compute_dtype):
    """Streaming pass 1. Grid = (B, N-tile): accumulate energy, softmax on last tile."""
    nt = pl.program_id(1)

    @pl.when(nt == 0)
    def _init():
        energy_ref[...] = jnp.zeros_like(energy_ref)

    xc = _maybe_cast(x_ref[...], compute_dtype)                          # (C, TN)
    energy_ref[...] += lax.dot_general(xc, xc, dimension_numbers=_XXT_DIMS,
                                       preferred_element_type=jnp.float32)

    @pl.when(nt == pl.num_programs(1) - 1)
    def _softmax():
        attn_ref[...] = _stable_attention(energy_ref[...], gamma_ref[0],
                                          attn_ref.dtype,
                                          approx=compute_dtype != jnp.float32)


def _cam_apply_kernel(attn_ref, x_ref, o_ref, *, compute_dtype):
    """Streaming pass 2. Grid = (B, N-tile), fully parallel: out = attn @ x + x."""
    x = x_ref[...]
    xc = _maybe_cast(x, compute_dtype)
    out = lax.dot_general(attn_ref[...], xc, dimension_numbers=_ATTN_X_DIMS,
                          preferred_element_type=jnp.float32)            # (C, TN) f32
    _residual_store(o_ref, out, x)


# ------------------------------------------------------------------ tiling / VMEM sizing
def _round_up(x, m):
    return ((x + m - 1) // m) * m


def _vmem_budget():
    try:
        cap = pltpu.get_tpu_info().vmem_capacity_bytes
    except Exception:
        cap = 64 << 20              # conservative: v7x has 64 MiB per TensorCore
    # Never request the whole chip; leave headroom for Mosaic-internal scratch.
    return min((cap * 3) // 4, 100 << 20)


def _resident_bytes(c, n_pad, x_item, comp_item):
    # 2x double-buffered x slabs + 2x out slabs + f32 energy/attn + cast copy + f32 temp
    return (4 * c * n_pad * x_item + 2 * c * c * 4
            + c * n_pad * comp_item + c * n_pad * 4 + _SLACK_BYTES)


def _stream_bytes(c, t, x_item, comp_item):
    # pass 1: 2 x tiles, f32 energy scratch, 2 attn out bufs, cast copy, f32 dot temp
    b_energy = (2 * c * t * x_item + c * c * 4 + 2 * c * c * comp_item
                + c * t * comp_item + c * c * 4)
    # pass 2: 2 attn bufs, 2 x tiles, 2 out tiles, f32 intermediate, cast copy
    b_apply = (2 * c * c * comp_item + 4 * c * t * x_item
               + c * t * 4 + c * t * comp_item)
    return max(b_energy, b_apply) + _SLACK_BYTES


def _choose_tile_n(n128, c, x_item, comp_item, budget, cap=8192):
    """Largest lane-aligned N tile that fits the VMEM budget with minimal padding."""
    best = None                      # lexicographic min of (n_pad, -tile_n)
    t = 128
    while t <= min(cap, n128):
        if _stream_bytes(c, t, x_item, comp_item) <= budget:
            n_pad = _round_up(n128, t)
            key = (n_pad, -t)
            if best is None or key < best:
                best = key
        t += 128
    if best is None:                 # extremely large C: still correct, may spill
        return 128, n128
    return -best[1], best[0]


# --------------------------------------------------------------------------------- wrapper
def cam_module_forward(x, gamma, *, compute_dtype=jnp.bfloat16, tile_n=None,
                       force_streaming=False):
    """CAM_Module.forward.  x: (B, C, H, W), gamma: (1,) -> (B, C, H, W)."""
    B, C, H, W = x.shape
    N = H * W
    x_item = np.dtype(x.dtype).itemsize
    comp_item = np.dtype(compute_dtype).itemsize
    budget = int(_vmem_budget())

    gamma = jnp.asarray(gamma, jnp.float32).reshape((1,))

    n128 = _round_up(max(N, 128), 128)
    resident_ok = _resident_bytes(C, n128, x_item, comp_item) <= budget
    use_resident = resident_ok and not force_streaming and tile_n is None

    if use_resident:
        n_pad, num_nt = n128, 1
    else:
        if tile_n is None:
            tile_n, n_pad = _choose_tile_n(n128, C, x_item, comp_item, budget)
        else:
            assert tile_n % 128 == 0, "tile_n must be lane-aligned (multiple of 128)"
            n_pad = _round_up(n128, tile_n)
        num_nt = n_pad // tile_n

    xf = x.reshape(B, C, N)
    if n_pad != N:
        # Zero columns contribute exactly 0 to both matmuls -> padding is numerically free.
        xf = jnp.pad(xf, ((0, 0), (0, 0), (0, n_pad - N)))

    gamma_spec = pl.BlockSpec(memory_space=pltpu.MemorySpace.SMEM)

    def compiler_params(sem):
        return pltpu.CompilerParams(dimension_semantics=sem, vmem_limit_bytes=budget)

    if use_resident:
        kernel = functools.partial(_cam_fused_kernel, compute_dtype=compute_dtype)
        out = pl.pallas_call(
            kernel,
            out_shape=jax.ShapeDtypeStruct((B, C, n_pad), x.dtype),
            grid_spec=pltpu.PrefetchScalarGridSpec(
                num_scalar_prefetch=0,
                grid=(B,),
                in_specs=[gamma_spec,
                          pl.BlockSpec((pl.Squeezed(), C, n_pad), lambda b: (b, 0, 0))],
                out_specs=pl.BlockSpec((pl.Squeezed(), C, n_pad), lambda b: (b, 0, 0)),
            ),
            compiler_params=compiler_params(("parallel",)),
        )(gamma, xf)
    else:
        # Pass 1: per-batch channel-attention matrix (gamma folded in).
        energy_kernel = functools.partial(_cam_energy_kernel, compute_dtype=compute_dtype)
        attn = pl.pallas_call(
            energy_kernel,
            out_shape=jax.ShapeDtypeStruct((B, C, C), compute_dtype),
            grid_spec=pltpu.PrefetchScalarGridSpec(
                num_scalar_prefetch=0,
                grid=(B, num_nt),
                in_specs=[gamma_spec,
                          pl.BlockSpec((pl.Squeezed(), C, tile_n),
                                       lambda b, n: (b, 0, n))],
                out_specs=pl.BlockSpec((pl.Squeezed(), C, C), lambda b, n: (b, 0, 0)),
                scratch_shapes=[pltpu.VMEM((C, C), jnp.float32)],
            ),
            compiler_params=compiler_params(("parallel", "arbitrary")),
        )(gamma, xf)

        # Pass 2: out_tile = attn @ x_tile + x_tile. Every grid axis is "parallel",
        # so both TensorCores split the N tiles even when B == 1 (v7x).
        apply_kernel = functools.partial(_cam_apply_kernel, compute_dtype=compute_dtype)
        out = pl.pallas_call(
            apply_kernel,
            out_shape=jax.ShapeDtypeStruct((B, C, n_pad), x.dtype),
            grid_spec=pltpu.PrefetchScalarGridSpec(
                num_scalar_prefetch=0,
                grid=(B, num_nt),
                in_specs=[pl.BlockSpec((pl.Squeezed(), C, C), lambda b, n: (b, 0, 0)),
                          pl.BlockSpec((pl.Squeezed(), C, tile_n),
                                       lambda b, n: (b, 0, n))],
                out_specs=pl.BlockSpec((pl.Squeezed(), C, tile_n),
                                       lambda b, n: (b, 0, n)),
            ),
            compiler_params=compiler_params(("parallel", "parallel")),
        )(attn, xf)

    if n_pad != N:
        out = out[:, :, :N]
    return out.reshape(B, C, H, W)


# --------------------------------------------------------------------------------- reference
def cam_module_reference(x, gamma):
    """Pure-JAX reference mirroring the PyTorch CAM_Module.forward."""
    B, C, H, W = x.shape
    q = x.reshape(B, C, -1).astype(jnp.float32)                         # (B, C, N)
    energy = jnp.einsum('bcn,bdn->bcd', q, q,
                        precision=lax.Precision.HIGHEST)                # (B, C, C)
    energy_new = jnp.max(energy, -1, keepdims=True) - energy
    attention = jax.nn.softmax(energy_new, axis=-1)
    out = jnp.einsum('bcd,bdn->bcn', attention, q,
                     precision=lax.Precision.HIGHEST)
    return (gamma * out.reshape(B, C, H, W) + x.astype(jnp.float32)).astype(x.dtype)


if __name__ == "__main__":
    key = jax.random.PRNGKey(0)
    B, C, H, W = 2, 4, 16, 16
    x = jax.random.normal(key, (B, C, H, W), dtype=jnp.float32)

    # The module initializes gamma = Parameter(torch.zeros(1)); use a nonzero value so
    # the attention branch actually contributes to the checked output.
    gamma = jnp.full((1,), 0.7, dtype=jnp.float32)
    ref = cam_module_reference(x, gamma[0])

    # 1) f32 resident (fused) path: validates forward semantics tightly.
    out_f32 = jax.block_until_ready(
        cam_module_forward(x, gamma, compute_dtype=jnp.float32))
    assert out_f32.shape == (B, C, H, W)
    assert jnp.allclose(out_f32, ref, atol=2e-2, rtol=2e-2), "f32 resident mismatch"

    # 2) default bf16-MXU resident path (performance path).
    out_bf16 = jax.block_until_ready(cam_module_forward(x, gamma))
    assert jnp.allclose(out_bf16, ref, atol=0.15, rtol=0.15), "bf16 resident mismatch"

    # 3) streaming two-pass path with multi-tile energy accumulation (f32, tight).
    out_stream = jax.block_until_ready(
        cam_module_forward(x, gamma, compute_dtype=jnp.float32,
                           tile_n=128, force_streaming=True))
    assert jnp.allclose(out_stream, ref, atol=2e-2, rtol=2e-2), "f32 streaming mismatch"

    # 4) streaming bf16 path (looser tolerance for bf16 matmul operands).
    out_stream_bf16 = jax.block_until_ready(
        cam_module_forward(x, gamma, tile_n=128, force_streaming=True))
    assert jnp.allclose(out_stream_bf16, ref, atol=0.15, rtol=0.15), "bf16 streaming mismatch"

    # 5) non-lane-aligned spatial size: exercises the zero-padding path.
    x2 = jax.random.normal(jax.random.PRNGKey(1), (1, 4, 9, 9), dtype=jnp.float32)
    ref2 = cam_module_reference(x2, gamma[0])
    out2 = jax.block_until_ready(
        cam_module_forward(x2, gamma, compute_dtype=jnp.float32))
    assert jnp.allclose(out2, ref2, atol=2e-2, rtol=2e-2), "padded-N mismatch"

    # 6) gamma == 0 (the module's init value) must reduce to the identity exactly.
    out_zero = jax.block_until_ready(
        cam_module_forward(x, jnp.zeros((1,), jnp.float32)))
    assert jnp.allclose(out_zero, x, atol=1e-6), "gamma=0 identity mismatch"

    print("KERNEL_OK")
</pallas_src>

<mosaic_0001>
module attributes {stable_mosaic.version = 11 : i64} {
  func.func @_cam_fused_kernel(%arg0: i32, %arg1: memref<1xf32, #tpu.memory_space<smem>>, %arg2: memref<1x4x256xf32, #tpu.memory_space<vmem>>, %arg3: memref<1x4x256xf32, #tpu.memory_space<vmem>>) attributes {dimension_semantics = [#tpu.dimension_semantics<parallel>], iteration_bounds = array<i64: 2>, scalar_prefetch = 0 : i64, scratch_operands = 0 : i64, tpu.core_type = #tpu.core_type<tc>, window_params = [{transform_indices = @transform_0, window_bounds = array<i64: 1>}, {transform_indices = @transform_1, window_bounds = array<i64: 1, 4, 256>}, {transform_indices = @transform_2, window_bounds = array<i64: 1, 4, 256>}]} {
    %c0 = arith.constant 0 : index
    %c0_0 = arith.constant 0 : index
    %c0_1 = arith.constant 0 : index
    %0 = vector.load %arg2[%c0, %c0_0, %c0_1] : memref<1x4x256xf32, #tpu.memory_space<vmem>>, vector<1x4x256xf32>
    %1 = vector.shape_cast %0 : vector<1x4x256xf32> to vector<4x256xf32>
    %cst = arith.constant dense<0.000000e+00> : vector<4x4xf32>
    %2 = tpu.matmul %1, %1, %cst {dimension_numbers = #tpu.dot_dimension_numbers<[1], [1], [0], [0], [0, 0, 1, 0], [], []>} : vector<4x256xf32>, vector<4x256xf32>, vector<4x4xf32> -> vector<4x4xf32>
    %c0_2 = arith.constant 0 : index
    %3 = memref.load %arg1[%c0_2] : memref<1xf32, #tpu.memory_space<smem>>
    %cst_3 = arith.constant dense<0x7F800000> : vector<4xf32>
    %4 = vector.multi_reduction <minimumf>, %2, %cst_3 [1] : vector<4x4xf32> to vector<4xf32>
    %5 = vector.shape_cast %4 : vector<4xf32> to vector<4x1xf32>
    %6 = vector.broadcast %5 : vector<4x1xf32> to vector<4x4xf32>
    %7 = arith.subf %6, %2 : vector<4x4xf32>
    %8 = math.exp %7 : vector<4x4xf32>
    %cst_4 = arith.constant dense<0.000000e+00> : vector<4xf32>
    %9 = vector.multi_reduction <add>, %8, %cst_4 [1] : vector<4x4xf32> to vector<4xf32>
    %10 = vector.shape_cast %9 : vector<4xf32> to vector<4x1xf32>
    %11 = tpu.reciprocal %10 : vector<4x1xf32> -> vector<4x1xf32>
    %12 = vector.broadcast %11 : vector<4x1xf32> to vector<4x4xf32>
    %13 = arith.mulf %8, %12 : vector<4x4xf32>
    %14 = vector.broadcast %3 : f32 to vector<4x4xf32>
    %15 = arith.mulf %13, %14 : vector<4x4xf32>
    %cst_5 = arith.constant dense<0.000000e+00> : vector<4x256xf32>
    %16 = tpu.matmul %15, %1, %cst_5 {dimension_numbers = #tpu.dot_dimension_numbers<[1], [0], [0], [1], [0, 0, 1, 1], [], []>} : vector<4x4xf32>, vector<4x256xf32>, vector<4x256xf32> -> vector<4x256xf32>
    %17 = arith.addf %16, %1 : vector<4x256xf32>
    %c0_6 = arith.constant 0 : index
    %c0_7 = arith.constant 0 : index
    %c0_8 = arith.constant 0 : index
    %18 = vector.load %arg3[%c0_6, %c0_7, %c0_8] : memref<1x4x256xf32, #tpu.memory_space<vmem>>, vector<1x4x256xf32>
    %19 = vector.shape_cast %18 : vector<1x4x256xf32> to vector<4x256xf32>
    %20 = vector.shape_cast %17 : vector<4x256xf32> to vector<1x4x256xf32>
    tpu.vector_store %arg3[%c0_6, %c0_7, %c0_8], %20 {strides = array<i32>} : memref<1x4x256xf32, #tpu.memory_space<vmem>>, vector<1x4x256xf32>,
    return
  }
  func.func @transform_0(%arg0: i32) -> i32 {
    %c0_i32 = arith.constant 0 : i32
    %c0_i32_0 = arith.constant 0 : i32
    return %c0_i32 : i32
  }
  func.func @transform_1(%arg0: i32) -> (i32, i32, i32) {
    %c0_i32 = arith.constant 0 : i32
    %c0_i32_0 = arith.constant 0 : i32
    %c0_i32_1 = arith.constant 0 : i32
    return %arg0, %c0_i32, %c0_i32_0 : i32, i32, i32
  }
  func.func @transform_2(%arg0: i32) -> (i32, i32, i32) {
    %c0_i32 = arith.constant 0 : i32
    %c0_i32_0 = arith.constant 0 : i32
    %c0_i32_1 = arith.constant 0 : i32
    return %arg0, %c0_i32, %c0_i32_0 : i32, i32, i32
  }
}

</mosaic_0001>

<bundles_post_ra>
// kernel: tpu_custom_call.1
= control target key start
LH: loop header
LB: loop body
LE: loop exit
PB: predicated region body
PF: predicated region fallthrough
CT: control target
= control target key end

     0   :  { %s713_s0 = inlined_call_operand.<no memory space> [shape: f32[1], index: 0, kind: input, shape index: {}]   ;;  %s714_s1 = inlined_call_operand.hbm [shape: f32[2,4,256], index: 1, kind: input, shape index: {}]   ;;  %s715_s2 = inlined_call_operand.hbm [shape: f32[2,4,256], index: 2, kind: output, shape index: {}]  }
   0x1   :  { %7 = sst [smem:[#allocation2]] %s713_s0 }
   0x2   :  { %8 = vsyncpa [#allocation4], 0 }
   0x3   :  { %10 = vsyncpa [#allocation4 + $0x1], 0 }
   0x4   :  { %11 = vsyncpa [#allocation5], 0 }
   0x5   :  { %13 = vsyncpa [#allocation5 + $0x1], 0  ;;  %s579_s11 = smov 0   ;;  %s581_s12 = smov 0  }
   0x6   :  { %s583_s13 = smov 0   ;;  %s585_s14 = smov 0  }
   0x7 LB: > { %s600_s0 = sadd.s32 4294967295, %s559_s14   ;;  %s393_s15 = sadd.s32 4294967294, %s559_s14   ;;  %s559_s14 = sphi %s585_s14, %s725_s14   ;;  %s555_s13 = sphi %s583_s13, %s724_s13   ;;  %s551_s12 = sphi %s581_s12, %s723_s12   ;;  %s547_s11 = sphi %s579_s11, %s722_s11  }
   0x8   : > { %s604_s16 = sadd.s32 1, %s559_s14   ;;  %s47_s17 = sadd.s32 1, %s555_s13 }
   0x9   : > { %s44_s18 = ssub.s32 %s559_s14, %s604_s16  ;;  %p54_p0 = scmp.ne.s32.totalorder %s555_s13, %s551_s12 }
   0xa   : > { %p45_p1 = scmp.eq.s32.totalorder %s44_s18, 0  ;;  %p55_p2 = scmp.eq.s32.totalorder %s559_s14, 0 }
   0xb   : > { %p60_p3 = scmp.ne.s32.totalorder %s551_s12, %s547_s11  ;;  %p61_p4 = scmp.eq.s32.totalorder %s600_s0, 0 }
   0xc   : > { %s616_s19 = scalar_select %p45_p1, %s555_s13, %s47_s17  }
   0xd   : > { %p618_p5 = por %p55_p2, %p54_p0  ;;  %p622_p6 = por %p61_p4, %p60_p3 }
   0xe   : > { %p84_p7 = scmp.eq.s32.totalorder %s600_s0, 1  ;;  %p90_p8 = scmp.eq.s32.totalorder %s393_s15, 1 }
   0xf   : > { %p425_p10 = scmp.lt.s32.totalorder %s559_s14, 2  ;;  %s113_s24 = sand.u32 1, %s555_s13  }
  0x10   : > { %p629_p11 = por %p84_p7, %p54_p0  ;;  %p633_p12 = por %p90_p8, %p60_p3 }
  0x11   : > { %s411_s25 = sshll.u32 %s559_s14, 3  ;;  %s396_s26 = sshll.u32 %s113_s24, 3 }
  0x12   : > { %s122_s29 = scalar_lea.hbm %s714_s1, %s411_s25  ;;  %s117_s3 = scalar_lea.vmem [#allocation3], %s396_s26 }
  0x13   : > { %s124_s30 = sshll.u32 %s122_s29, 4  ;;  %s126_s4 = sshll.u32 %s117_s3, 4  ;;  %s125_s30 = int_to_ptr.hbm [resolvable:$true] %s124_s30  ;;  %s127_s4 = int_to_ptr.vmem [resolvable:$true] %s126_s4 }
  0x14   : > { %p644_p13 = pnand %p425_p10, %p618_p5  ;;  %p399_p0 = scmp.ge.s32.totalorder %s559_s14, 1 }
  0x15   : > { %p131_p1 = scmp.lt.s32.totalorder %s559_s14, 3  ;;  %s114_s6 = scalar_lea.sflag [#allocation4], %s113_s24 }
  0x16   : > { %s463_s7 = sshra.s32 %s125_s30, 4  ;;  %p467_p3 = pneg %p644_p13  ;;  %s464_s7 = int_to_ptr.hbm [resolvable:$true] %s463_s7 }
  0x17   : > { %s465_s8 = scalar_lea.hbm %s464_s7, 8  ;;  %s470_s15 = scalar_lea.hbm %s714_s1, 16 }
  0x18   : > { %p466_p2 = scmp.ne.s32.totalorder %s464_s7, %s465_s8  ;;  %p471_p5 = scmp.lt.s32.totalorder %s464_s7, %s714_s1 }
  0x19   : > { %p472_p8 = scmp.lt.s32.totalorder %s470_s15, %s465_s8 }
  0x1a   : > { %p468_p4 = pnand %p467_p3, %p466_p2 }
  0x1b   : > { %p473_p10 = por %p472_p8, %p471_p5 }
  0x1c   : > { %p469_p7 = pneg %p468_p4 }
  0x1e   : > { %p474_p9 = pnand %p473_p10, %p469_p7 }
  0x20   : > { %477 = shalt.err (!%p474_p9)
}
  0x21   : > { %420 = dma.hbm_to_vmem [thread:$0]  (!%p644_p13), %s125_s30, 128, %s127_s4, %s114_s6  }
  0x22   : > { %p132_p2 = pnand %p399_p0, %p131_p1 }
  0x23   : > { %s665_s20 = sand.u32 (!%p132_p2), 1, %s551_s12  }
  0x24   : > { %135 = sbr.rel (%p132_p2) target bundleno = 596 (0x254), region = 28  ;;  %s400_s24 = sshll.u32 (!%p132_p2), %s665_s20, 3 }
  0x25   : > { %s138_s25 = scalar_lea.sflag (!%p132_p2), [#allocation4], %s665_s20  ;;  %s141_s26 = scalar_lea.vmem (!%p132_p2), [#allocation3], %s400_s24 }
  0x29   : > { %538 = dma.done.wait (%p622_p6), %s138_s25, 128  }
  0x2a   : > { %540 = vsyncadd (%p622_p6), %s138_s25, 4294967168  ;;  %v163_v0 = vld [vmem:[%s141_s26] sm:$0xff]  ;;  %vm216_vm0 = vcmask 27648   ;;  %vm255_vm1 = vcmask 1043456   ;;  %s215_s21 = sld [smem:[#allocation2]]  ;;  %vm251_vm6 = vcmask 31744  }
  0x2b   : > { %165 = vst [vmem:[#allocation1] ss:$2 sm:$0xff] %v163_v0  ;;  %s412_s27 = sshll.u32 %s600_s0, 3  ;;  %s162_s3 = scalar_lea.vmem [#allocation6], %s400_s24 }
  0x2c   : > { %s318_s30 = scalar_lea.hbm %s715_s2, %s412_s27  ;;  %s320_s4 = sshll.u32 %s162_s3, 4  ;;  %s321_s4 = int_to_ptr.vmem [resolvable:$true] %s320_s4 }
  0x2d   : > { %s322_s5 = sshll.u32 %s318_s30, 4  ;;  %s307_s0 = scalar_lea.sflag [#allocation5], %s665_s20  ;;  %s323_s5 = int_to_ptr.hbm [resolvable:$true] %s322_s5 }
  0x2e   : > { %s507_s6 = sshra.s32 %s323_s5, 4  ;;  %s513_s10 = scalar_lea.hbm %s715_s2, 16  ;;  %s508_s6 = int_to_ptr.hbm [resolvable:$true] %s507_s6 }
  0x2f   : > { %s509_s7 = scalar_lea.hbm %s508_s6, 8  ;;  %p514_p0 = scmp.lt.s32.totalorder %s508_s6, %s715_s2 }
  0x30   : > { %v241_v27 = vstv %s215_s21  ;;  %p510_p6 = scmp.ne.s32.totalorder %s508_s6, %s509_s7  ;;  %p515_p1 = scmp.lt.s32.totalorder %s513_s10, %s509_s7 }
  0x32   : > { %v166_v1 = vld.sshfl [vmem:[#allocation1] sm:$0xff pattern:$0x75316420]  ;;  %v167_v2 = vld.sshfl [vmem:[#allocation1 + $0x8] sm:$0xff pattern:$0x75316420]  ;;  %p511_p9 = pnand %p510_p6, %p629_p11  ;;  %p516_p3 = por %p515_p1, %p514_p0 }
  0x33   : > { %170 = vst [vmem:[#allocation1] ss:$2 sm:$0xff] %v163_v0 }
  0x34   : > { %p512_p13 = pneg %p511_p9 }
  0x36   : > { %p517_p4 = pnand %p516_p3, %p512_p13 }
  0x3a   : > { %v171_v3 = vld.sshfl [vmem:[#allocation1] sm:$0xff pattern:$0x75316420]  ;;  %v172_v4 = vld.sshfl [vmem:[#allocation1 + $0x8] sm:$0xff pattern:$0x75316420] }
  0x3b   : > { %190 = vmatpush.xpose.msra.mxu0 %v171_v3  ;;  %210 = vmatpush.xpose.msra.mxu1 %v172_v4  ;;  %243 = vst [vmem:[#allocation1] ss:$2 sm:$0xff] %v163_v0 }
  0x3e   : > { %191 = vmatmul.f32.vlgmr.msra.gmra.mxu0 %v166_v1  ;;  %211 = vmatmul.f32.vlgmr.msra.gmra.mxu1 %v167_v2 }
  0x42   : > { %v244_v14 = vld.sshfl [vmem:[#allocation1] sm:$0xff pattern:$0x75316420]  ;;  %v245_v15 = vld.sshfl [vmem:[#allocation1 + $0x8] sm:$0xff pattern:$0x75316420] }
  0x43   : > { %402 = vmatpush.msk.msra.mxu2 %vm255_vm1, %v244_v14  ;;  %246 = vst [vmem:[#allocation1] ss:$2 sm:$0xff] %v163_v0  ;;  %404 = vmatpush.msk.msra.mxu3 %vm255_vm1, %v245_v15 }
  0x4a   : > { %v248_v30 = vld.sshfl [vmem:[#allocation1 + $0x8] sm:$0xff pattern:$0x75316420]  ;;  %v247_v31 = vld.sshfl [vmem:[#allocation1] sm:$0xff pattern:$0x75316420] }
  0xbb   : > { %v192_v5 = vpop.f32.mrf.mxu0  ;;  %v212_v6 = vpop.f32.mrf.mxu1 }
  0xbc   : > { %v213_v7 = vadd.f32 %v212_v6, %v192_v5 }
  0xbe   : > { %v217_v8 = vsel %vm216_vm0, %v213_v7, inf }
  0xbf   : > { %218 = vmin.xlane.f32.xlu0 %v217_v8 }
 0x132   : > { %v219_v9 = vpop.xlane.xlu0 %218 }
 0x133   : > { %v220_v10 = vsub.f32 %v219_v9, %v213_v7 }
 0x135   : > { %v221_v11 = vmul.f32 1.442695, %v220_v10 }
 0x137   : > { %459 = vpow2.f32 %v221_v11 }
 0x13d   : > { %v460_v12 = vpop.eup %459 }
 0x13e   : > { %v223_v13 = vsel %vm216_vm0, %v460_v12, 0.0 }
 0x13f   : > { %224 = vadd.xlane.f32.xlu0 %v223_v13 }
 0x1b2   : > { %v225_v16 = vpop.xlane.xlu0 %224 }
 0x1b3   : > { %461 = vrcp.f32 %v225_v16  ;;  %v237_v20 = vand.u32 2147483648, %v225_v16  ;;  %v235_v22 = vand.u32 2147483647, %v225_v16  ;;  %vm231_vm3 = vweird.f32 %v225_v16 }
 0x1b5   : > { %v238_v24 = vor.u32 1.1754944e-38, %v237_v20  ;;  %vm236_vm5 = vcmp.eq.f32.partialorder %v235_v22, 8.507059e+37 }
 0x1b9   : > { %v462_v17 = vpop.eup %461 }
 0x1ba   : > { %v227_v18 = vmul.f32 %v462_v17, %v225_v16  ;;  %vm232_vm2 = vweird.f32 %v462_v17 }
 0x1bb   : > { %vm233_vm4 = vmor %vm231_vm3, %vm232_vm2 }
 0x1bc   : > { %v228_v19 = vsub.f32 1.0, %v227_v18 }
 0x1be   : > { %v229_v21 = vmul.f32 %v462_v17, %v228_v19 }
 0x1c0   : > { %v230_v23 = vadd.f32 %v462_v17, %v229_v21 }
 0x1c2   : > { %v234_v25 = vsel %vm233_vm4, %v462_v17, %v230_v23 }
 0x1c3   : > { %v239_v26 = vsel %vm236_vm5, %v238_v24, %v234_v25 }
 0x1c4   : > { %v240_v28 = vmul.f32 %v460_v12, %v239_v26 }
 0x1c6   : > { %v242_v29 = vmul.f32 %v241_v27, %v240_v28 }
 0x1c8   : > { %403 = vmatmul.msk.f32.vlgmr.msra.gmra.mxu2 %vm251_vm6, %v242_v29  ;;  %405 = vmatmul.msk.f32.vlgmr.msra.gmra.mxu3 %vm251_vm6, %v242_v29 }
 0x24b   : > { %v277_v32 = vpop.f32.mrf.mxu2  ;;  %v297_v33 = vpop.f32.mrf.mxu3 }
 0x24c   : > { %v298_v34 = vadd.f32 %v297_v33, %v248_v30  ;;  %v278_v35 = vadd.f32 %v277_v32, %v247_v31 }
 0x24e   : > { %v302_v36 = vrot.slane %v298_v34, 4 }
 0x250   : > { %v303_v37 = vsel %vm255_vm1, %v278_v35, %v302_v36 }
 0x251   : > { %305 = vst [vmem:[%s162_s3] sm:$0xff] %v303_v37 }
 0x252   : > { %520 = shalt.err (!%p517_p4)
}
 0x253   : > { %415 = dma.vmem_to_hbm [thread:$0]  (%p629_p11), %s321_s4, 128, %s323_s5, %s307_s0  }
 0x254 PF: > { %s334_s18 = sand.u32 1, %s547_s11   ;;  %p721_p7 = scmp.ge.s32.totalorder %s559_s14, 2 }
 0x255   : > { %s335_s20 = scalar_lea.sflag [#allocation5], %s334_s18 }
 0x256   : > { %p422_p5 = pnand %p721_p7, %p633_p12 }
 0x258   : > { %p423_p8 = pneg %p422_p5 }
 0x25a   : > { %542 = dma.done.wait (%p423_p8), %s335_s20, 128  }
 0x25b   : > { %544 = vsyncadd (%p423_p8), %s335_s20, 4294967168  ;;  %p16_p10 = scmp.ge.s32.totalorder %s604_s16, 4   ;;  %s722_s11 = smov %s551_s12 }
 0x25c   : > { %s723_s12 = smov %s555_s13  ;;  %s724_s13 = smov %s616_s19 }
 0x25d   : > { %s725_s14 = smov %s604_s16  ;;  %18 = sbr.rel (!%p16_p10) target bundleno = 7 (0x7), region = 73 }
 0x262   :  { %341 = vsyncpa [#allocation4], 1 }
 0x263   :  { %343 = vsyncpa [#allocation4 + $0x1], 1 }
 0x264   :  { %344 = vsyncpa [#allocation5], 1 }
 0x265   :  { %346 = vsyncpa [#allocation5 + $0x1], 1 }

</bundles_post_ra>
